<compile_context>
chip_gen: v6e
topology: v6e:2x2x1
jax: 0.10.0
libtpu: 0.0.40
codegen_flags: <defaults>
</compile_context>

<pallas_src>
import jax
import jax.numpy as jnp
from jax.experimental import pallas as pl
from jax.experimental.pallas import tpu as pltpu


def _round_up(x: int, m: int) -> int:
    return (x + m - 1) // m * m


def _spec(shape, index_map, mode=None):
    if mode is None:
        return pl.BlockSpec(shape, index_map)
    return pl.BlockSpec(shape, index_map, pipeline_mode=mode)


# --------------------------------------------------------------------------
# Kernel bodies
# --------------------------------------------------------------------------
def _epilogue(raw, out_ref, conditioned, bound_tanh, Oa):
    """Head epilogue: tanh only on mu lanes, exp/clip only on sigma lanes."""
    if conditioned:
        mu = raw[:, :Oa]
        if bound_tanh:
            mu = jnp.tanh(mu)
        sig = jnp.exp(jnp.clip(raw[:, Oa:], -20.0, 2.0))
        out_ref[:, :Oa] = mu.astype(out_ref.dtype)
        out_ref[:, Oa:] = sig.astype(out_ref.dtype)
    else:
        mu = jnp.tanh(raw) if bound_tanh else raw
        out_ref[...] = mu.astype(out_ref.dtype)


def _make_resident_kernel(conditioned: bool, bound_tanh: bool, Oa: int):
    """Both (H, H) MLP weights fully VMEM-resident; grid=(nb,)."""

    def kernel(x_ref, w1_ref, b1_ref, w2_ref, b2_ref, wh_ref, bh_ref, out_ref):
        cd = w1_ref.dtype
        h = jnp.dot(x_ref[...], w1_ref[...], preferred_element_type=jnp.float32)
        h = jnp.maximum(h + b1_ref[...], 0.0)
        h = jnp.dot(h.astype(cd), w2_ref[...], preferred_element_type=jnp.float32)
        h = jnp.maximum(h + b2_ref[...], 0.0)
        raw = jnp.dot(h.astype(cd), wh_ref[...],
                      preferred_element_type=jnp.float32) + bh_ref[...]
        _epilogue(raw, out_ref, conditioned, bound_tanh, Oa)

    return kernel


def _make_ktiled_kernel(conditioned: bool, bound_tanh: bool, Oa: int):
    """Hidden dim chunked: per step load (H, tk) of w1 and (tk, H) of w2.

    h1_chunk = relu(x @ w1[:, chunk] + b1[chunk]) is independent per chunk, and
    w2's K reduction is accumulated in an f32 VMEM scratch; bias/ReLU/head run
    at the final reduction step.
    """

    def kernel(x_ref, w1_ref, b1_ref, w2_ref, b2_ref, wh_ref, bh_ref,
               out_ref, acc_ref):
        cd = w1_ref.dtype
        k = pl.program_id(1)

        @pl.when(k == 0)
        def _():
            acc_ref[...] = jnp.zeros_like(acc_ref)

        h1 = jnp.dot(x_ref[...], w1_ref[...], preferred_element_type=jnp.float32)
        h1 = jnp.maximum(h1 + b1_ref[...], 0.0)
        acc_ref[...] += jnp.dot(h1.astype(cd), w2_ref[...],
                                preferred_element_type=jnp.float32)

        @pl.when(k == pl.num_programs(1) - 1)
        def _():
            h2 = jnp.maximum(acc_ref[...] + b2_ref[...], 0.0)
            raw = jnp.dot(h2.astype(cd), wh_ref[...],
                          preferred_element_type=jnp.float32) + bh_ref[...]
            _epilogue(raw, out_ref, conditioned, bound_tanh, Oa)

    return kernel


# --------------------------------------------------------------------------
# One-time parameter preprocessing (hoisted out of the per-call wrapper)
# --------------------------------------------------------------------------
def prepare_params(params, *, sigma_type, compute_dtype=jnp.float32):
    """Fuse head weights into a lane-dense, 128-aligned slab. Call ONCE."""
    if sigma_type not in ("fixed", "independent", "conditioned"):
        raise ValueError(f"unknown sigma_type: {sigma_type}")
    H = params["w1"].shape[0]
    O = params["wmu"].shape[1]
    Oa = _round_up(O, 128)
    cd = compute_dtype

    prep = {
        "w1": params["w1"].astype(cd),
        "b1": params["b1"].astype(jnp.float32),
        "w2": params["w2"].astype(cd),
        "b2": params["b2"].astype(jnp.float32),
    }
    if sigma_type == "conditioned":
        P = 2 * Oa
        wh = jnp.zeros((H, P), cd)
        wh = wh.at[:, :O].set(params["wmu"].astype(cd))
        wh = wh.at[:, Oa:Oa + O].set(params["sp"].astype(cd))
        bh = jnp.zeros((1, P), jnp.float32)
        bh = bh.at[:, :O].set(params["bmu"].astype(jnp.float32))
        bh = bh.at[:, Oa:Oa + O].set(params["sb"].astype(jnp.float32))
        sig_row = None
    else:
        P = Oa
        wh = jnp.zeros((H, Oa), cd).at[:, :O].set(params["wmu"].astype(cd))
        bh = jnp.zeros((1, Oa), jnp.float32).at[:, :O].set(
            params["bmu"].astype(jnp.float32))
        if sigma_type == "independent":
            sig_row = jnp.exp(params["sp"]).astype(jnp.float32)   # (1, O)
        else:  # fixed
            sig_row = params["sp"].astype(jnp.float32)            # (1, O)

    prep["wh"] = wh
    prep["bh"] = bh
    prep["sig_row"] = sig_row
    prep["meta"] = dict(H=H, O=O, Oa=Oa, P=P, sigma_type=sigma_type,
                        compute_dtype=cd)
    return prep


def _choose_k_tile(H, cdsz, budget_bytes):
    """None => keep both (H,H) weights fully VMEM-resident."""
    if 2 * H * H * cdsz <= budget_bytes or H % 128 != 0:
        return None
    best = 128
    for cand in range(128, H, 128):
        # two chunks (H*tk and tk*H), double-buffered
        if H % cand == 0 and 4 * H * cand * cdsz <= budget_bytes:
            best = cand
    return best


# --------------------------------------------------------------------------
# Wrapper
# --------------------------------------------------------------------------
def reparameterization_head(x, prep, *, bound_type=None, batch_tile=None,
                            k_tile=None, weight_budget_bytes=24 << 20):
    """x: (B, hidden). prep: output of prepare_params(). Returns {'mu','sigma'}."""
    meta = prep["meta"]
    H, O, Oa, P = meta["H"], meta["O"], meta["Oa"], meta["P"]
    sigma_type = meta["sigma_type"]
    cd = meta["compute_dtype"]
    conditioned = sigma_type == "conditioned"
    bound_tanh = bound_type == "tanh"

    B = x.shape[0]
    assert x.shape[1] == H
    x = x.astype(cd)

    cdsz = jnp.dtype(cd).itemsize
    pack = {4: 8, 2: 16, 1: 32}.get(cdsz, 8)     # sublane pack per dtype

    # ---- batch tiling: dtype-pack aligned, >=2 steps when possible (v7x TCs)
    Bp0 = _round_up(B, pack)
    cap = 512 if H <= 2048 else 256
    if batch_tile is None:
        if Bp0 <= pack:
            batch_tile = Bp0
        else:
            batch_tile = min(cap, max(pack, (Bp0 // 2) // pack * pack))
    batch_tile = _round_up(batch_tile, pack)
    Bp = _round_up(B, batch_tile)
    if Bp != B:
        x = jnp.pad(x, ((0, Bp - B), (0, 0)))
    nb = Bp // batch_tile
    single_step_batch = nb == 1

    # ---- hidden-dim (K) tiling decision
    if k_tile is None:
        k_tile = _choose_k_tile(H, cdsz, weight_budget_bytes)
    elif k_tile >= H or H % k_tile != 0 or k_tile % 128 != 0:
        k_tile = None  # invalid override -> resident path

    res_mode = pl.Buffered(1)                         # constant-index operands
    io_mode = pl.Buffered(1) if single_step_batch else None

    if k_tile is None:
        kernel = _make_resident_kernel(conditioned, bound_tanh, Oa)
        grid = (nb,)
        in_specs = [
            _spec((batch_tile, H), lambda i: (i, 0), io_mode),   # x
            _spec((H, H), lambda i: (0, 0), res_mode),           # w1
            _spec((1, H), lambda i: (0, 0), res_mode),           # b1
            _spec((H, H), lambda i: (0, 0), res_mode),           # w2
            _spec((1, H), lambda i: (0, 0), res_mode),           # b2
            _spec((H, P), lambda i: (0, 0), res_mode),           # fused head W
            _spec((1, P), lambda i: (0, 0), res_mode),           # fused head b
        ]
        out_spec = _spec((batch_tile, P), lambda i: (i, 0), io_mode)
        scratch_shapes = ()
        dims = ("parallel",)
        nbuf = 1 if single_step_batch else 2
        vmem = (2 * H * H * cdsz + 2 * H * 4
                + H * P * cdsz + P * 4
                + nbuf * batch_tile * H * cdsz
                + nbuf * batch_tile * P * 4)
    else:
        kernel = _make_ktiled_kernel(conditioned, bound_tanh, Oa)
        nk = H // k_tile
        grid = (nb, nk)
        in_specs = [
            _spec((batch_tile, H), lambda i, k: (i, 0), io_mode),  # x (resident over k)
            _spec((H, k_tile), lambda i, k: (0, k)),               # w1 chunk
            _spec((1, k_tile), lambda i, k: (0, k)),               # b1 chunk
            _spec((k_tile, H), lambda i, k: (k, 0)),               # w2 chunk
            _spec((1, H), lambda i, k: (0, 0), res_mode),          # b2
            _spec((H, P), lambda i, k: (0, 0), res_mode),          # fused head W
            _spec((1, P), lambda i, k: (0, 0), res_mode),          # fused head b
        ]
        out_spec = _spec((batch_tile, P), lambda i, k: (i, 0), io_mode)
        scratch_shapes = (pltpu.VMEM((batch_tile, H), jnp.float32),)
        dims = ("parallel", "arbitrary")
        nbuf = 1 if single_step_batch else 2
        vmem = (2 * (H * k_tile * cdsz + k_tile * 4 + k_tile * H * cdsz)
                + H * 4 + H * P * cdsz + P * 4
                + nbuf * batch_tile * H * cdsz
                + nbuf * batch_tile * P * 4
                + batch_tile * H * 4)

    vmem_limit = max(16 << 20, min(int(vmem * 1.3) + (2 << 20), 100 << 20))

    n_trans = Bp * Oa * ((1 if conditioned else 0) + (1 if bound_tanh else 0))
    cost = pl.CostEstimate(
        flops=2 * Bp * (2 * H * H + H * P),
        transcendentals=int(n_trans),
        bytes_accessed=int(Bp * H * cdsz + (2 * H * H + H * P) * cdsz
                           + (2 * H + P) * 4 + Bp * P * 4),
    )

    packed = pl.pallas_call(
        kernel,
        out_shape=jax.ShapeDtypeStruct((Bp, P), jnp.float32),
        grid=grid,
        in_specs=in_specs,
        out_specs=out_spec,
        scratch_shapes=scratch_shapes,
        compiler_params=pltpu.CompilerParams(
            dimension_semantics=dims,
            vmem_limit_bytes=vmem_limit,
        ),
        cost_estimate=cost,
    )(x, prep["w1"], prep["b1"], prep["w2"], prep["b2"], prep["wh"], prep["bh"])

    mu = packed[:B, :O]
    if conditioned:
        sigma = packed[:B, Oa:Oa + O]                 # 128-aligned slice
    else:
        sigma = jnp.broadcast_to(prep["sig_row"], (B, O))
    return {"mu": mu, "sigma": sigma}


# --------------------------------------------------------------------------
# Parameter init + pure-JAX reference
# --------------------------------------------------------------------------
def init_params(key, hidden_size, output_size, *, sigma_type="conditioned",
                fixed_sigma_value=1.0, dtype=jnp.float32):
    """Deterministic synthetic parameter init (shapes match the nn.Module)."""
    ks = jax.random.split(key, 8)

    def lin(kw, kb, fan_in, fan_out):
        s = 1.0 / jnp.sqrt(fan_in)
        w = jax.random.uniform(kw, (fan_in, fan_out), dtype, -s, s)
        b = jax.random.uniform(kb, (1, fan_out), dtype, -s, s)
        return w, b

    w1, b1 = lin(ks[0], ks[1], hidden_size, hidden_size)
    w2, b2 = lin(ks[2], ks[3], hidden_size, hidden_size)
    wmu, bmu = lin(ks[4], ks[5], hidden_size, output_size)

    if sigma_type == "conditioned":
        sp, sb = lin(ks[6], ks[7], hidden_size, output_size)
    elif sigma_type == "independent":
        sp = jnp.zeros((1, output_size), dtype)          # log_sigma_param
        sb = jnp.zeros((1, output_size), dtype)          # unused
    else:  # fixed
        sp = jnp.full((1, output_size), fixed_sigma_value, dtype)
        sb = jnp.zeros((1, output_size), dtype)          # unused

    return {"w1": w1, "b1": b1, "w2": w2, "b2": b2,
            "wmu": wmu, "bmu": bmu, "sp": sp, "sb": sb}


def _reference(x, params, sigma_type, bound_type):
    """Pure-JAX reference matching the PyTorch forward semantics."""
    h = jnp.maximum(x @ params["w1"] + params["b1"], 0.0)
    h = jnp.maximum(h @ params["w2"] + params["b2"], 0.0)
    mu = h @ params["wmu"] + params["bmu"]
    if bound_type == "tanh":
        mu = jnp.tanh(mu)
    if sigma_type == "fixed":
        sigma = params["sp"] + jnp.zeros_like(mu)
    elif sigma_type == "independent":
        sigma = jnp.exp(params["sp"] + jnp.zeros_like(mu))
    else:
        sigma = jnp.exp(jnp.clip(h @ params["sp"] + params["sb"], -20.0, 2.0))
    return mu, sigma


if __name__ == "__main__":
    key = jax.random.PRNGKey(0)
    kx, kp = jax.random.split(key)

    # (B, H, O, sigma_type, bound_type, compute_dtype, k_tile, tol)
    cases = [
        (8,  32,  16, "conditioned", None,   jnp.float32,  None, 1e-5),
        (8,  32,  16, "conditioned", "tanh", jnp.float32,  None, 1e-5),
        (8,  32,  16, "fixed",       None,   jnp.float32,  None, 1e-5),
        (8,  32,  16, "independent", "tanh", jnp.float32,  None, 1e-5),
        (5,  32,  16, "conditioned", None,   jnp.float32,  None, 1e-5),   # padded batch
        (20, 32,  16, "conditioned", None,   jnp.float32,  None, 1e-5),   # multi batch step
        (8,  32,  16, "conditioned", "tanh", jnp.bfloat16, None, 5e-2),   # bf16 MXU path
        (16, 256, 16, "conditioned", "tanh", jnp.float32,  128,  1e-3),   # K-tiled path
        (16, 256, 16, "independent", None,   jnp.float32,  128,  1e-3),   # K-tiled, mu-only
    ]

    ok = True
    for (B, H, O, sigma_type, bound_type, cdt, ktile, tol) in cases:
        x = jax.random.normal(kx, (B, H), jnp.float32)
        params = init_params(kp, H, O, sigma_type=sigma_type,
                             fixed_sigma_value=1.0)
        prep = prepare_params(params, sigma_type=sigma_type, compute_dtype=cdt)
        out = reparameterization_head(x, prep, bound_type=bound_type,
                                      k_tile=ktile)
        jax.block_until_ready(out)

        mu_ref, sigma_ref = _reference(x, params, sigma_type, bound_type)
        case_ok = bool(jnp.allclose(out["mu"], mu_ref, atol=tol, rtol=tol))
        case_ok &= bool(jnp.allclose(out["sigma"], sigma_ref, atol=tol, rtol=tol))
        case_ok &= out["mu"].shape == (B, O) and out["sigma"].shape == (B, O)
        if not case_ok:
            print(f"MISMATCH: B={B} H={H} O={O} sigma={sigma_type} "
                  f"bound={bound_type} dtype={cdt} k_tile={ktile}")
        ok &= case_ok

    if ok:
        print("KERNEL_OK")
</pallas_src>

<mosaic_0001>
module attributes {stable_mosaic.version = 11 : i64} {
  func.func @kernel(%arg0: i32, %arg1: memref<8x32xf32, #tpu.memory_space<vmem>>, %arg2: memref<32x32xf32, #tpu.memory_space<vmem>>, %arg3: memref<1x32xf32, #tpu.memory_space<vmem>>, %arg4: memref<32x32xf32, #tpu.memory_space<vmem>>, %arg5: memref<1x32xf32, #tpu.memory_space<vmem>>, %arg6: memref<32x256xf32, #tpu.memory_space<vmem>>, %arg7: memref<1x256xf32, #tpu.memory_space<vmem>>, %arg8: memref<8x256xf32, #tpu.memory_space<vmem>>) attributes {dimension_semantics = [#tpu.dimension_semantics<parallel>], iteration_bounds = array<i64: 1>, scalar_prefetch = 0 : i64, scratch_operands = 0 : i64, tpu.core_type = #tpu.core_type<tc>, window_params = [{pipeline_mode = #tpu.pipeline_mode<synchronous>, transform_indices = @transform_0, window_bounds = array<i64: 8, 32>}, {pipeline_mode = #tpu.pipeline_mode<synchronous>, transform_indices = @transform_1, window_bounds = array<i64: 32, 32>}, {pipeline_mode = #tpu.pipeline_mode<synchronous>, transform_indices = @transform_2, window_bounds = array<i64: 1, 32>}, {pipeline_mode = #tpu.pipeline_mode<synchronous>, transform_indices = @transform_3, window_bounds = array<i64: 32, 32>}, {pipeline_mode = #tpu.pipeline_mode<synchronous>, transform_indices = @transform_4, window_bounds = array<i64: 1, 32>}, {pipeline_mode = #tpu.pipeline_mode<synchronous>, transform_indices = @transform_5, window_bounds = array<i64: 32, 256>}, {pipeline_mode = #tpu.pipeline_mode<synchronous>, transform_indices = @transform_6, window_bounds = array<i64: 1, 256>}, {pipeline_mode = #tpu.pipeline_mode<synchronous>, transform_indices = @transform_7, window_bounds = array<i64: 8, 256>}]} {
    %c0 = arith.constant 0 : index
    %c0_0 = arith.constant 0 : index
    %0 = vector.load %arg1[%c0, %c0_0] : memref<8x32xf32, #tpu.memory_space<vmem>>, vector<8x32xf32>
    %c0_1 = arith.constant 0 : index
    %c0_2 = arith.constant 0 : index
    %1 = vector.load %arg2[%c0_1, %c0_2] : memref<32x32xf32, #tpu.memory_space<vmem>>, vector<32x32xf32>
    %cst = arith.constant dense<0.000000e+00> : vector<8x32xf32>
    %2 = tpu.matmul %0, %1, %cst {dimension_numbers = #tpu.dot_dimension_numbers<[1], [0], [0], [1], [0, 0, 1, 1], [], []>} : vector<8x32xf32>, vector<32x32xf32>, vector<8x32xf32> -> vector<8x32xf32>
    %c0_3 = arith.constant 0 : index
    %c0_4 = arith.constant 0 : index
    %3 = vector.load %arg3[%c0_3, %c0_4] : memref<1x32xf32, #tpu.memory_space<vmem>>, vector<1x32xf32>
    %4 = vector.broadcast %3 : vector<1x32xf32> to vector<8x32xf32>
    %5 = arith.addf %2, %4 : vector<8x32xf32>
    %cst_5 = arith.constant 0.000000e+00 : f32
    %6 = vector.broadcast %cst_5 : f32 to vector<8x32xf32>
    %7 = arith.maximumf %5, %6 : vector<8x32xf32>
    %c0_6 = arith.constant 0 : index
    %c0_7 = arith.constant 0 : index
    %8 = vector.load %arg4[%c0_6, %c0_7] : memref<32x32xf32, #tpu.memory_space<vmem>>, vector<32x32xf32>
    %cst_8 = arith.constant dense<0.000000e+00> : vector<8x32xf32>
    %9 = tpu.matmul %7, %8, %cst_8 {dimension_numbers = #tpu.dot_dimension_numbers<[1], [0], [0], [1], [0, 0, 1, 1], [], []>} : vector<8x32xf32>, vector<32x32xf32>, vector<8x32xf32> -> vector<8x32xf32>
    %c0_9 = arith.constant 0 : index
    %c0_10 = arith.constant 0 : index
    %10 = vector.load %arg5[%c0_9, %c0_10] : memref<1x32xf32, #tpu.memory_space<vmem>>, vector<1x32xf32>
    %11 = vector.broadcast %10 : vector<1x32xf32> to vector<8x32xf32>
    %12 = arith.addf %9, %11 : vector<8x32xf32>
    %cst_11 = arith.constant 0.000000e+00 : f32
    %13 = vector.broadcast %cst_11 : f32 to vector<8x32xf32>
    %14 = arith.maximumf %12, %13 : vector<8x32xf32>
    %c0_12 = arith.constant 0 : index
    %c0_13 = arith.constant 0 : index
    %15 = vector.load %arg6[%c0_12, %c0_13] : memref<32x256xf32, #tpu.memory_space<vmem>>, vector<32x256xf32>
    %cst_14 = arith.constant dense<0.000000e+00> : vector<8x256xf32>
    %16 = tpu.matmul %14, %15, %cst_14 {dimension_numbers = #tpu.dot_dimension_numbers<[1], [0], [0], [1], [0, 0, 1, 1], [], []>} : vector<8x32xf32>, vector<32x256xf32>, vector<8x256xf32> -> vector<8x256xf32>
    %c0_15 = arith.constant 0 : index
    %c0_16 = arith.constant 0 : index
    %17 = vector.load %arg7[%c0_15, %c0_16] : memref<1x256xf32, #tpu.memory_space<vmem>>, vector<1x256xf32>
    %18 = vector.broadcast %17 : vector<1x256xf32> to vector<8x256xf32>
    %19 = arith.addf %16, %18 : vector<8x256xf32>
    %20 = vector.extract_strided_slice %19 {offsets = [0, 0], sizes = [8, 128], strides = [1, 1]} : vector<8x256xf32> to vector<8x128xf32>
    %21 = vector.extract_strided_slice %19 {offsets = [0, 128], sizes = [8, 128], strides = [1, 1]} : vector<8x256xf32> to vector<8x128xf32>
    %cst_17 = arith.constant -2.000000e+01 : f32
    %cst_18 = arith.constant 2.000000e+00 : f32
    %22 = vector.broadcast %cst_17 : f32 to vector<8x128xf32>
    %23 = arith.maximumf %22, %21 : vector<8x128xf32>
    %24 = vector.broadcast %cst_18 : f32 to vector<8x128xf32>
    %25 = arith.minimumf %24, %23 : vector<8x128xf32>
    %26 = math.exp %25 : vector<8x128xf32>
    %c0_19 = arith.constant 0 : index
    %c0_20 = arith.constant 0 : index
    %27 = vector.load %arg8[%c0_19, %c0_20] : memref<8x256xf32, #tpu.memory_space<vmem>>, vector<8x128xf32>
    tpu.vector_store %arg8[%c0_19, %c0_20], %20 {strides = array<i32>} : memref<8x256xf32, #tpu.memory_space<vmem>>, vector<8x128xf32>,
    %c0_21 = arith.constant 0 : index
    %c128 = arith.constant 128 : index
    %28 = vector.load %arg8[%c0_21, %c128] : memref<8x256xf32, #tpu.memory_space<vmem>>, vector<8x128xf32>
    tpu.vector_store %arg8[%c0_21, %c128], %26 {strides = array<i32>} : memref<8x256xf32, #tpu.memory_space<vmem>>, vector<8x128xf32>,
    return
  }
  func.func @transform_0(%arg0: i32) -> (i32, i32) {
    %c0_i32 = arith.constant 0 : i32
    %c0_i32_0 = arith.constant 0 : i32
    return %arg0, %c0_i32 : i32, i32
  }
  func.func @transform_1(%arg0: i32) -> (i32, i32) {
    %c0_i32 = arith.constant 0 : i32
    %c0_i32_0 = arith.constant 0 : i32
    %c0_i32_1 = arith.constant 0 : i32
    return %c0_i32, %c0_i32_0 : i32, i32
  }
  func.func @transform_2(%arg0: i32) -> (i32, i32) {
    %c0_i32 = arith.constant 0 : i32
    %c0_i32_0 = arith.constant 0 : i32
    %c0_i32_1 = arith.constant 0 : i32
    return %c0_i32, %c0_i32_0 : i32, i32
  }
  func.func @transform_3(%arg0: i32) -> (i32, i32) {
    %c0_i32 = arith.constant 0 : i32
    %c0_i32_0 = arith.constant 0 : i32
    %c0_i32_1 = arith.constant 0 : i32
    return %c0_i32, %c0_i32_0 : i32, i32
  }
  func.func @transform_4(%arg0: i32) -> (i32, i32) {
    %c0_i32 = arith.constant 0 : i32
    %c0_i32_0 = arith.constant 0 : i32
    %c0_i32_1 = arith.constant 0 : i32
    return %c0_i32, %c0_i32_0 : i32, i32
  }
  func.func @transform_5(%arg0: i32) -> (i32, i32) {
    %c0_i32 = arith.constant 0 : i32
    %c0_i32_0 = arith.constant 0 : i32
    %c0_i32_1 = arith.constant 0 : i32
    return %c0_i32, %c0_i32_0 : i32, i32
  }
  func.func @transform_6(%arg0: i32) -> (i32, i32) {
    %c0_i32 = arith.constant 0 : i32
    %c0_i32_0 = arith.constant 0 : i32
    %c0_i32_1 = arith.constant 0 : i32
    return %c0_i32, %c0_i32_0 : i32, i32
  }
  func.func @transform_7(%arg0: i32) -> (i32, i32) {
    %c0_i32 = arith.constant 0 : i32
    %c0_i32_0 = arith.constant 0 : i32
    return %arg0, %c0_i32 : i32, i32
  }
}

</mosaic_0001>

<bundles_post_ra>
// kernel: tpu_custom_call.1
= control target key start
LH: loop header
LB: loop body
LE: loop exit
PB: predicated region body
PF: predicated region fallthrough
CT: control target
= control target key end

     0   :  { %12 = vsyncpa [#allocation3], 0  ;;  %s605_s0 = inlined_call_operand.hbm [shape: f32[8,32], index: 0, kind: input, shape index: {}]   ;;  %s606_s1 = inlined_call_operand.hbm [shape: f32[32,32], index: 1, kind: input, shape index: {}]   ;;  %s607_s2 = inlined_call_operand.vmem [shape: f32[1,32], index: 2, kind: input, shape index: {}]   ;;  %s608_s3 = inlined_call_operand.hbm [shape: f32[32,32], index: 3, kind: input, shape index: {}]   ;;  %s609_s4 = inlined_call_operand.vmem [shape: f32[1,32], index: 4, kind: input, shape index: {}]   ;;  %s610_s5 = inlined_call_operand.hbm [shape: f32[32,256], index: 5, kind: input, shape index: {}]   ;;  %s611_s6 = inlined_call_operand.vmem [shape: f32[1,256], index: 6, kind: input, shape index: {}]   ;;  %s612_s7 = inlined_call_operand.hbm [shape: f32[8,256], index: 7, kind: output, shape index: {}]  }
   0x1   :  { %13 = vsyncpa [#allocation6], 0 }
   0x2   :  { %14 = vsyncpa [#allocation9], 0 }
   0x3   :  { %15 = vsyncpa [#allocation4], 0  ;;  %s527_s24 = smov [#allocation5]  }
   0x4   :  { %s31_s25 = sshll.u32 %s527_s24, 4  ;;  %s32_s25 = int_to_ptr.vmem [resolvable:$true] %s31_s25 }
   0x5   :  { %s427_s26 = scalar_lea.vmem %s32_s25, 512  ;;  %p432_p1 = scmp.lt.s32.totalorder %s32_s25, %s32_s25 }
   0x6   :  { %p428_p0 = scmp.ne.s32.totalorder %s32_s25, %s427_s26  ;;  %p433_p2 = scmp.lt.s32.totalorder %s427_s26, %s427_s26 }
   0x8   :  { %p434_p3 = por %p433_p2, %p432_p1 }
   0xa   :  { %p435_p4 = pnand %p434_p3, %p428_p0 }
   0xc   :  { %438 = shalt.err (!%p435_p4)
}
   0xd   :  { %s528_s27 = smov 128   ;;  %s529_s28 = smov 8  }
   0xe   :  { %37 = dma.hbm_to_vmem [thread:$0]  %s606_s1, 512, %s32_s25, [#allocation6], %s528_s27, %s528_s27, %s529_s28  }
   0xf   :  { %s530_s8 = smov [#allocation2]   ;;  %s531_s10 = smov [#allocation7]  }
  0x10   :  { %s22_s9 = sshll.u32 %s530_s8, 4  ;;  %s45_s11 = sshll.u32 %s531_s10, 4  ;;  %s23_s9 = int_to_ptr.vmem [resolvable:$true] %s22_s9  ;;  %s46_s11 = int_to_ptr.vmem [resolvable:$true] %s45_s11 }
  0x11   :  { %s447_s12 = scalar_lea.vmem %s23_s9, 128  ;;  %p452_p6 = scmp.lt.s32.totalorder %s23_s9, %s23_s9 }
  0x12   :  { %p448_p5 = scmp.ne.s32.totalorder %s23_s9, %s447_s12  ;;  %p453_p7 = scmp.lt.s32.totalorder %s447_s12, %s447_s12 }
  0x14   :  { %p454_p8 = por %p453_p7, %p452_p6 }
  0x16   :  { %p455_p9 = pnand %p454_p8, %p448_p5 }
  0x18   :  { %458 = shalt.err (!%p455_p9)
}
  0x19   :  { %25 = dma.hbm_to_vmem [thread:$0]  %s605_s0, 128, %s23_s9, [#allocation3]  }
  0x1a   :  { %s467_s15 = scalar_lea.vmem %s46_s11, 512  ;;  %p472_p11 = scmp.lt.s32.totalorder %s46_s11, %s46_s11 }
  0x1b   :  { %p468_p10 = scmp.ne.s32.totalorder %s46_s11, %s467_s15  ;;  %p473_p12 = scmp.lt.s32.totalorder %s467_s15, %s467_s15 }
  0x1d   :  { %p474_p13 = por %p473_p12, %p472_p11 }
  0x1f   :  { %p475_p0 = pnand %p474_p13, %p468_p10 }
  0x21   :  { %478 = shalt.err (!%p475_p0)
}
  0x22   :  { %51 = dma.hbm_to_vmem [thread:$0]  %s608_s3, 512, %s46_s11, [#allocation6], %s528_s27, %s528_s27, %s529_s28  }
  0x23   :  { %s532_s17 = smov [#allocation8]  }
  0x24   :  { %s59_s18 = sshll.u32 %s532_s17, 4  ;;  %s60_s18 = int_to_ptr.vmem [resolvable:$true] %s59_s18 }
  0x25   :  { %s487_s19 = scalar_lea.vmem %s60_s18, 1024  ;;  %p492_p2 = scmp.lt.s32.totalorder %s60_s18, %s60_s18 }
  0x26   :  { %p488_p1 = scmp.ne.s32.totalorder %s60_s18, %s487_s19  ;;  %p493_p3 = scmp.lt.s32.totalorder %s487_s19, %s487_s19 }
  0x28   :  { %p494_p4 = por %p493_p3, %p492_p2 }
  0x2a   :  { %p495_p5 = pnand %p494_p4, %p488_p1 }
  0x2c   :  { %498 = shalt.err (!%p495_p5)
}
  0x2d   :  { %s533_s0 = smov 256   ;;  %s534_s20 = smov 16  }
  0x2e   :  { %65 = dma.hbm_to_vmem [thread:$0]  %s610_s5, 1024, %s60_s18, [#allocation9], %s533_s0, %s533_s0, %s534_s20  }
  0x2f   :  { %519 = dma.done.wait [#allocation3], 128  }
  0x30   :  { %520 = vsyncadd [#allocation3], 4294967168 }
  0x31   :  { %521 = dma.done.wait [#allocation6], 1024  }
  0x32   :  { %522 = vsyncadd [#allocation6], 4294966272 }
  0x33   :  { %523 = dma.done.wait [#allocation9], 1024  }
  0x34   :  { %524 = vsyncadd [#allocation9], 4294966272  ;;  %v535_v0 = vmov 0.0   ;;  %vm536_vm0 = vmmov 0   ;;  %v84_v1 = vld [vmem:[#allocation5 + $0x18] sm:$0xff]  ;;  %v83_v2 = vld [vmem:[#allocation5 + $0x10] sm:$0xff]  ;;  %v262_v28 = vlaneseq }
  0x35   :  { %384 = vmatprep.subr.mxu0 %v535_v0  ;;  %392 = vmatprep.mubr.msk.f32.mxu0 %vm536_vm0, %v535_v0  ;;  %v170_v3 = vld [vmem:[#allocation7 + $0x18] sm:$0xff]  ;;  %v82_v4 = vld [vmem:[#allocation5 + $0x8] sm:$0xff]  ;;  %v81_v5 = vld [vmem:[#allocation5] sm:$0xff]  ;;  %vm92_vm1 = vcmask 261120  }
  0x36   :  { %395 = vmatprep.subr.mxu1 %v535_v0  ;;  %403 = vmatprep.mubr.msk.f32.mxu1 %vm536_vm0, %v535_v0  ;;  %v80_v6 = vld [vmem:[#allocation2] sm:$0xff]  ;;  %v169_v7 = vld [vmem:[#allocation7 + $0x10] sm:$0xff]  ;;  %v168_v8 = vld [vmem:[#allocation7 + $0x8] sm:$0xff]  ;;  %v263_v29 = vshrl.u32 %v262_v28, 7 }
  0x37   :  { %385 = vmatpush3.msra.mxu0 %v84_v1  ;;  %396 = vmatpush3.msra.mxu1 %v170_v3  ;;  %v167_v9 = vld [vmem:[#allocation7] sm:$0xff]  ;;  %v259_v10 = vld [vmem:[#allocation8 + $0x38] sm:$0xff]  ;;  %v258_v11 = vld [vmem:[#allocation8 + $0x30] sm:$0xff] }
  0x38   :  { %386 = vmatprep.subr.mxu0 %v535_v0  ;;  %397 = vmatprep.subr.mxu1 %v535_v0  ;;  %v257_v12 = vld [vmem:[#allocation8 + $0x28] sm:$0xff]  ;;  %v369_v13 = vld [vmem:[%s607_s2] ss:$0 sm:$0xff]  ;;  %v256_v18 = vld [vmem:[#allocation8 + $0x20] sm:$0xff]  ;;  %v264_v30 = vsub.s32 0, %v263_v29  ;;  %v268_v32 = vsub.s32 1, %v263_v29 }
  0x39   :  { %387 = vmatpush3.msra.mxu0 %v83_v2  ;;  %398 = vmatpush3.msra.mxu1 %v169_v7  ;;  %v255_v19 = vld [vmem:[#allocation8 + $0x18] sm:$0xff]  ;;  %v254_v20 = vld [vmem:[#allocation8 + $0x10] sm:$0xff]  ;;  %v253_v21 = vld [vmem:[#allocation8 + $0x8] sm:$0xff] }
  0x3a   :  { %388 = vmatprep.subr.mxu0 %v535_v0  ;;  %399 = vmatprep.subr.mxu1 %v535_v0  ;;  %v252_v22 = vld [vmem:[#allocation8] sm:$0xff]  ;;  %v371_v23 = vld [vmem:[%s609_s4] ss:$0 sm:$0xff]  ;;  %s537_s4 = smov [#allocation10]  }
  0x3b   :  { %389 = vmatpush3.msra.mxu0 %v82_v4  ;;  %400 = vmatpush3.msra.mxu1 %v168_v8  ;;  %v260_v31 = vld [vmem:[%s611_s6] sm:$0x3]  ;;  %s358_s26 = sshll.u32 %s537_s4, 4  ;;  %s359_s26 = int_to_ptr.vmem [resolvable:$true] %s358_s26 }
  0x3c   :  { %390 = vmatprep.subr.mxu0 %v535_v0  ;;  %401 = vmatprep.subr.mxu1 %v535_v0  ;;  %v265_v33 = vrot.slane %v260_v31, %v264_v30  ;;  %v269_v34 = vrot.slane %v260_v31, %v268_v32  ;;  %s499_s27 = scalar_lea.vmem %s359_s26, 256  ;;  %p504_p7 = scmp.lt.s32.totalorder %s359_s26, %s359_s26 }
  0x3d   :  { %391 = vmatpush3.msra.mxu0 %v81_v5  ;;  %402 = vmatpush3.msra.mxu1 %v167_v9  ;;  %p500_p6 = scmp.ne.s32.totalorder %s359_s26, %s499_s27  ;;  %p505_p8 = scmp.lt.s32.totalorder %s499_s27, %s499_s27 }
  0x3e   :  { %393 = vmatmul.mubr.msk.f32.vlgmr.msra.gmra.mxu0 %vm92_vm1, %v80_v6  ;;  %299 = vmatprep.subr.mxu0 %v259_v10 }
  0x3f   :  { %339 = vmatprep.mubr.f32.mxu0 %v535_v0  ;;  %300 = vmatpush1.msra.mxu0 %v258_v11  ;;  %p506_p9 = por %p505_p8, %p504_p7 }
  0x40   :  { %301 = vmatprep.subr.mxu0 %v257_v12 }
  0x41   :  { %302 = vmatpush1.msra.mxu0 %v256_v18  ;;  %p507_p10 = pnand %p506_p9, %p500_p6 }
  0x42   :  { %303 = vmatprep.subr.mxu0 %v255_v19 }
  0x43   :  { %304 = vmatpush1.msra.mxu0 %v254_v20 }
  0x44   :  { %305 = vmatprep.subr.mxu0 %v253_v21 }
  0x45   :  { %306 = vmatpush1.msra.mxu0 %v252_v22 }
  0xfe   :  { %v162_v14 = vpop.f32.mrf.mxu0 }
  0xff   :  { %v163_v15 = vadd.f32 %v369_v13, %v162_v14 }
 0x100   :  { %v394_v16 = vpop.f32.mrf.mxu0 }
 0x101   :  { %v166_v17 = vmax.f32 %v163_v15, 0.0 }
 0x103   :  { %404 = vmatmul.mubr.msk.f32.vlgmr.msra.gmra.mxu1 %vm92_vm1, %v166_v17 }
 0x1c3   :  { %v247_v24 = vpop.f32.mrf.mxu1 }
 0x1c4   :  { %v248_v25 = vadd.f32 %v371_v23, %v247_v24 }
 0x1c5   :  { %v405_v26 = vpop.f32.mrf.mxu1 }
 0x1c6   :  { %v251_v27 = vmax.f32 %v248_v25, 0.0 }
 0x1c8   :  { %373 = vmatmul.mubr.msk.f32.vlgmr.msra.gmra.mxu0 %vm92_vm1, %v251_v27 }
 0x288   :  { %v341_v35 = vpop.f32.mrf.mxu0 }
 0x289   :  { %v342_v36 = vadd.f32 %v341_v35, %v265_v33 }
 0x28a   :  { %v343_v37 = vpop.f32.mrf.mxu0 }
 0x28b   :  { %350 = vst [vmem:[#allocation10] sm:$0xff] %v342_v36  ;;  %v344_v38 = vadd.f32 %v343_v37, %v269_v34 }
 0x28d   :  { %v346_v39 = vmax.f32 %v344_v38, -20.0 }
 0x28f   :  { %v347_v40 = vmin.f32 %v346_v39, 2.0 }
 0x291   :  { %v348_v41 = vmul.f32 1.442695, %v347_v40 }
 0x293   :  { %417 = vpow2.f32 %v348_v41 }
 0x2a0   :  { %v418_v42 = vpop.eup %417 }
 0x2a1   :  { %351 = vst [vmem:[#allocation10 + $0x8] sm:$0xff] %v418_v42 }
 0x2a2   :  { %510 = shalt.err (!%p507_p10)
}
 0x2a3   :  { %361 = dma.vmem_to_hbm [thread:$0]  %s359_s26, 256, %s612_s7, [#allocation4]  }
 0x2a4   :  { %525 = dma.done.wait [#allocation4], 256  }
 0x2a5   :  { %526 = vsyncadd [#allocation4], 4294967040 }
 0x2a6   :  { %365 = vsyncpa [#allocation3], 1 }
 0x2a7   :  { %366 = vsyncpa [#allocation6], 1 }
 0x2a8   :  { %367 = vsyncpa [#allocation9], 1 }
 0x2a9   :  { %368 = vsyncpa [#allocation4], 1 }

</bundles_post_ra>
